<compile_context>
chip_gen: v7x
topology: tpu7x:2x2x1
jax: 0.10.0
libtpu: 0.0.40
codegen_flags: <defaults>
</compile_context>

<pallas_src>
import jax
import jax.numpy as jnp
from jax import lax
from jax.experimental import pallas as pl
from jax.experimental.pallas import tpu as pltpu

LANE = 128
_TARGET_TILE_BYTES = 2 * 1024 * 1024   # ~2 MiB streaming tile (v5e-safe, v6e/v7x-friendly)
_DIRECT_MIN_ELEMS = 64 * 1024          # below this, packing beats an extra kernel launch


def _cdiv(a, b):
    return -(-a // b)


def _block_rows_for(rows, itemsize):
    """Rows per streaming tile: ~2 MiB worth of rows, or the full slab if smaller."""
    target = max(8, _TARGET_TILE_BYTES // (LANE * int(itemsize)))
    return rows if rows <= target else target


# ----------------------------- Pallas kernels ------------------------------


def _sumsq_pallas(slab, block_rows):
    """Sum of squares of a (rows, 128) slab, accumulated in f32.

    grid = (n_cores, steps_per_core).  The f32 accumulator is a VMEM scratch
    resident across the "arbitrary" reduction axis (pure VPU work per step);
    on the last step it is reduced once (XLU) into a (1, 1) per-core partial,
    so only a few bytes are written back to HBM.
    """
    rows = slab.shape[0]
    steps = _cdiv(rows, block_rows)
    n_cores = 2 if steps >= 4 else 1            # leading "parallel" axis (megacore)
    steps_per_core = _cdiv(steps, n_cores)
    ragged_rows = rows != steps * block_rows
    ragged_steps = n_cores * steps_per_core != steps
    need_mask = ragged_rows or ragged_steps

    def kernel(x_ref, o_ref, acc_ref):
        i = pl.program_id(1)

        @pl.when(i == 0)
        def _init():
            acc_ref[...] = jnp.zeros_like(acc_ref)

        x = x_ref[...].astype(jnp.float32)
        if need_mask:
            # Zero rows past the real extent (partial last block and/or fully
            # out-of-range steps belonging to the second core).
            step = pl.program_id(0) * steps_per_core + i
            valid = rows - step * block_rows
            row_ids = lax.broadcasted_iota(jnp.int32, x.shape, 0)
            x = jnp.where(row_ids < valid, x, 0.0)
        acc_ref[...] += x * x

        @pl.when(i == steps_per_core - 1)
        def _finish():
            col = jnp.sum(acc_ref[...], axis=0, keepdims=True)   # (1, LANE)
            o_ref[...] = jnp.sum(col, axis=1, keepdims=True)     # (1, 1)

    def x_index(c, i):
        step = c * steps_per_core + i
        # Clamp fully out-of-range steps onto the last block (masked to 0 above).
        return (jnp.minimum(step, steps - 1), 0)

    partials = pl.pallas_call(
        kernel,
        out_shape=jax.ShapeDtypeStruct((n_cores, 1, 1), jnp.float32),
        grid_spec=pltpu.PrefetchScalarGridSpec(
            num_scalar_prefetch=0,
            grid=(n_cores, steps_per_core),
            in_specs=[pl.BlockSpec((block_rows, LANE), x_index)],
            out_specs=pl.BlockSpec((None, 1, 1), lambda c, i: (c, 0, 0)),
            scratch_shapes=[pltpu.VMEM((block_rows, LANE), jnp.float32)],
        ),
        compiler_params=pltpu.CompilerParams(
            dimension_semantics=("parallel", "arbitrary")),
    )(slab)
    return jnp.sum(partials)   # tiny (n_cores,) add in XLA


def _scale_pallas(slab, coef2d, block_rows):
    """o = x * coef on a (rows, 128) slab; coef is a (1, 1) f32 scalar in SMEM."""
    rows = slab.shape[0]
    steps = _cdiv(rows, block_rows)

    def kernel(coef_ref, x_ref, o_ref):
        c = coef_ref[0, 0]
        o_ref[...] = (x_ref[...].astype(jnp.float32) * c).astype(o_ref.dtype)

    return pl.pallas_call(
        kernel,
        out_shape=jax.ShapeDtypeStruct(slab.shape, slab.dtype),
        grid_spec=pltpu.PrefetchScalarGridSpec(
            num_scalar_prefetch=0,
            grid=(steps,),
            in_specs=[
                pl.BlockSpec(memory_space=pltpu.SMEM),              # scalar coef
                pl.BlockSpec((block_rows, LANE), lambda i: (i, 0)),
            ],
            out_specs=pl.BlockSpec((block_rows, LANE), lambda i: (i, 0)),
        ),
        compiler_params=pltpu.CompilerParams(
            dimension_semantics=("parallel",)),
    )(coef2d, slab)


# ------------------------------ JAX wrappers --------------------------------


def _build_plan(glist):
    """Lay each gradient out as one or more (rows, 128) slabs.

    'direct' tensors (size % 128 == 0 and >= _DIRECT_MIN_ELEMS) are a free
    reshape view of the caller's array (zero extra HBM traffic).  Everything
    else is packed per dtype (no up-cast) into one small slab with inert zero
    padding.  Returns (entries, slabs, packed_slab) describing how to rebuild
    the clipped tensors from the scaled slabs.
    """
    entries = []      # per tensor: ("zero",) | ("direct", slab_i) | ("packed", dtype, off, n)
    slabs = []        # list of (slab2d, block_rows)
    packed = {}       # dtype -> {"pieces": [...], "off": int}
    for g in glist:
        n = int(g.size)
        if n == 0:
            entries.append(("zero",))
            continue
        if n % LANE == 0 and n >= _DIRECT_MIN_ELEMS:
            rows = n // LANE
            slabs.append((g.reshape(rows, LANE),
                          _block_rows_for(rows, jnp.dtype(g.dtype).itemsize)))
            entries.append(("direct", len(slabs) - 1))
        else:
            key = jnp.dtype(g.dtype)
            grp = packed.setdefault(key, {"pieces": [], "off": 0})
            entries.append(("packed", key, grp["off"], n))
            grp["pieces"].append(g.reshape(-1))
            grp["off"] += n

    packed_slab = {}
    for key, grp in packed.items():
        total = grp["off"]
        pad = (-total) % LANE
        pieces = grp["pieces"]
        if pad:
            pieces = pieces + [jnp.zeros((pad,), key)]
        flat = pieces[0] if len(pieces) == 1 else jnp.concatenate(pieces)
        rows = (total + pad) // LANE
        slabs.append((flat.reshape(rows, LANE),
                      _block_rows_for(rows, jnp.dtype(key).itemsize)))
        packed_slab[key] = len(slabs) - 1
    return entries, slabs, packed_slab


def _plan_and_norm(glist):
    plan = _build_plan(glist)
    _, slabs, _ = plan
    if not slabs:
        return plan, jnp.asarray(0.0, jnp.float32)
    sq = jnp.asarray(0.0, jnp.float32)
    for slab, br in slabs:
        sq = sq + _sumsq_pallas(slab, br)
    return plan, jnp.sqrt(sq)


def _apply_clip(plan, glist, coef):
    entries, slabs, packed_slab = plan
    coef2d = jnp.asarray(coef, jnp.float32).reshape(1, 1)
    scaled = [_scale_pallas(slab, coef2d, br) for slab, br in slabs]
    packed_flat = {key: scaled[i].reshape(-1) for key, i in packed_slab.items()}
    out = []
    for g, e in zip(glist, entries):
        if e[0] == "zero":
            out.append(g)
        elif e[0] == "direct":
            out.append(scaled[e[1]].reshape(g.shape))
        else:
            _, key, off, n = e
            out.append(packed_flat[key][off:off + n].reshape(g.shape))
    return out


def clip_norm(grads, max_norm, norm_type: float = 2.0, error_if_nonfinite: bool = False):
    """Pallas port of lib/utils/grad.py::clip_norm (L2-norm path).

    Returns (total_norm, clipped_list).
    """
    single = isinstance(grads, jnp.ndarray)
    glist = [grads] if single else list(grads)
    norm_type = float(norm_type)
    if len(glist) == 0:
        return jnp.asarray(0.0, jnp.float32), []
    # TODO(synk): only the (default) 2-norm is implemented in-kernel; the
    # inf-norm / general p-norm branches need a different in-kernel reduction.
    assert norm_type == 2.0, "only norm_type=2 implemented"

    plan, total_norm = _plan_and_norm(glist)
    if error_if_nonfinite and not bool(jnp.isfinite(total_norm)):  # opt-in host sync
        raise RuntimeError(
            f"The total norm of order {norm_type} for gradients is non-finite, "
            f"so it cannot be clipped.")
    clip_coef = jnp.asarray(max_norm, jnp.float32) / (total_norm + 1e-6)
    clip_coef_clamped = jnp.minimum(clip_coef, 1.0)
    return total_norm, _apply_clip(plan, glist, clip_coef_clamped)


class NormClipper:
    """JAX/Pallas port of the PyTorch NormClipper module (forward pass).

    The start / max_norm<=0 branch is folded into jnp.where on device scalars,
    so clip() never blocks on a device->host sync in the hot path.
    """

    def __init__(self, initial_max_norm=100, rel_thresh=0.7, momentum=0.1):
        self.initial_max_norm = float(initial_max_norm)
        self.max_norm = jnp.asarray(-1.0, jnp.float32)   # register_buffer(tensor(-1.))
        self.momentum = momentum
        self.scale = 1 + rel_thresh
        self.last_norm = jnp.asarray(0.0, jnp.float32)
        self.start = jnp.asarray(True)                   # device bool (no host sync)

    def __call__(self, grads, norm_type=2):
        return self.clip(grads, norm_type)

    def clip(self, grads, norm_type=2):
        # TODO(synk): buffer updates are eager Python attribute mutations,
        # matching the mutable torch.nn.Module; a functional state-passing API
        # would be needed inside a jitted/scanned training step.
        assert float(norm_type) == 2.0, "only norm_type=2 implemented"
        single = isinstance(grads, jnp.ndarray)
        glist = [grads] if single else list(grads)

        plan, new_norm = _plan_and_norm(glist)

        use_init = jnp.logical_and(self.start, self.max_norm <= 0)
        eff_max = jnp.where(use_init, self.initial_max_norm, self.max_norm)
        coef = jnp.minimum(eff_max / (new_norm + 1e-6), 1.0)
        clipped = _apply_clip(plan, glist, coef)

        running = (self.max_norm * (1 - self.momentum)
                   + self.momentum * self.scale
                   * jnp.minimum(new_norm, self.max_norm * self.scale))
        self.max_norm = jnp.where(use_init, new_norm * self.scale, running)
        self.start = use_init        # stays True only while the init branch is taken
        self.last_norm = new_norm
        return clipped[0] if single else clipped


# ----------------------------------- main -----------------------------------

if __name__ == "__main__":
    key = jax.random.PRNGKey(0)
    k1, k2, k3, k4, k5, k6 = jax.random.split(key, 6)
    x = jax.random.normal(k1, (2, 4, 16, 16), dtype=jnp.float32)   # NCHW conv grad
    w = jax.random.normal(k2, (8, 32), dtype=jnp.float32)          # dense grad

    clipper = NormClipper(initial_max_norm=100, rel_thresh=0.7, momentum=0.1)

    # --- first call: single-tensor path (start branch, max_norm=100) ---
    out1 = jax.block_until_ready(clipper(x))
    tn1_ref = jnp.sqrt(jnp.sum(x.astype(jnp.float32) ** 2))
    coef1_ref = jnp.minimum(100.0 / (tn1_ref + 1e-6), 1.0)
    assert out1.shape == x.shape and out1.dtype == x.dtype
    assert jnp.allclose(out1, x * coef1_ref, rtol=1e-5, atol=1e-5)
    assert jnp.allclose(clipper.last_norm, tn1_ref, rtol=1e-5, atol=1e-5)

    # --- second call: list-of-tensors path (running max_norm branch) ---
    max_norm_before = clipper.max_norm
    out2 = [jax.block_until_ready(o) for o in clipper([x, w])]
    tn2_ref = jnp.sqrt(jnp.sum(x ** 2) + jnp.sum(w ** 2))
    coef2_ref = jnp.minimum(max_norm_before / (tn2_ref + 1e-6), 1.0)
    assert jnp.allclose(out2[0], x * coef2_ref, rtol=1e-5, atol=1e-5)
    assert jnp.allclose(out2[1], w * coef2_ref, rtol=1e-5, atol=1e-5)
    assert jnp.allclose(clipper.last_norm, tn2_ref, rtol=1e-5, atol=1e-5)

    # --- clip_norm directly with a small max_norm so scaling really fires.
    #     Exercises: direct zero-copy f32 and bf16 slabs, the multi-block grid
    #     with ragged tail + 2-core split + in-kernel masking, and the packed
    #     path with zero padding for a lane-ragged bias ---
    big = jax.random.normal(k3, (520, 512), dtype=jnp.float32)      # direct, single block
    huge = jax.random.normal(k4, (17000, 128), dtype=jnp.float32)   # direct, 5 blocks, ragged
    bias = jax.random.normal(k5, (33,), dtype=jnp.float32)          # ragged -> packed + pad
    hb = jax.random.normal(k6, (256, 512), dtype=jnp.float32).astype(jnp.bfloat16)  # direct bf16
    grads = [x, w, big, huge, bias, hb]
    tn3, clipped3 = clip_norm(grads, 1.0)
    clipped3 = [jax.block_until_ready(o) for o in clipped3]
    sq_ref = (jnp.sum(x ** 2) + jnp.sum(w ** 2) + jnp.sum(big ** 2)
              + jnp.sum(huge ** 2) + jnp.sum(bias ** 2)
              + jnp.sum(hb.astype(jnp.float32) ** 2))
    tn3_ref = jnp.sqrt(sq_ref)
    coef3_ref = jnp.minimum(1.0 / (tn3_ref + 1e-6), 1.0)
    assert jnp.allclose(tn3, tn3_ref, rtol=1e-4, atol=1e-4)
    for got, ref in zip(clipped3[:5], [x, w, big, huge, bias]):
        assert got.shape == ref.shape and got.dtype == ref.dtype
        assert jnp.allclose(got, ref * coef3_ref, rtol=1e-4, atol=1e-5)
    assert clipped3[5].dtype == jnp.bfloat16 and clipped3[5].shape == hb.shape
    hb_ref = (hb.astype(jnp.float32) * coef3_ref).astype(jnp.bfloat16)
    assert jnp.allclose(clipped3[5].astype(jnp.float32), hb_ref.astype(jnp.float32),
                        rtol=1e-2, atol=1e-2)

    print("KERNEL_OK")
</pallas_src>

<mosaic_0001>
module attributes {stable_mosaic.version = 11 : i64} {
  func.func @kernel(%arg0: i32, %arg1: i32, %arg2: memref<16x128xf32, #tpu.memory_space<vmem>>, %arg3: memref<1x1x1xf32, #tpu.memory_space<vmem>>, %arg4: memref<16x128xf32, #tpu.memory_space<vmem>>) attributes {dimension_semantics = [#tpu.dimension_semantics<parallel>, #tpu.dimension_semantics<arbitrary>], iteration_bounds = array<i64: 1, 1>, scalar_prefetch = 0 : i64, scratch_operands = 1 : i64, tpu.core_type = #tpu.core_type<tc>, window_params = [{transform_indices = @transform_0, window_bounds = array<i64: 16, 128>}, {transform_indices = @transform_1, window_bounds = array<i64: 1, 1, 1>}]} {
    %c0_i32 = arith.constant 0 : i32
    %0 = arith.cmpi eq, %arg1, %c0_i32 : i32
    %1 = arith.extui %0 : i1 to i32
    %c0_i32_0 = arith.constant 0 : i32
    %2 = arith.cmpi ne, %1, %c0_i32_0 : i32
    scf.if %2 {
      %cst = arith.constant 0.000000e+00 : f32
      %11 = vector.broadcast %cst : f32 to vector<16x128xf32>
      %c0_8 = arith.constant 0 : index
      %c0_9 = arith.constant 0 : index
      %12 = vector.load %arg4[%c0_8, %c0_9] : memref<16x128xf32, #tpu.memory_space<vmem>>, vector<16x128xf32>
      tpu.vector_store %arg4[%c0_8, %c0_9], %11 {strides = array<i32>} : memref<16x128xf32, #tpu.memory_space<vmem>>, vector<16x128xf32>,
    } else {
    }
    %c0 = arith.constant 0 : index
    %c0_1 = arith.constant 0 : index
    %3 = vector.load %arg2[%c0, %c0_1] : memref<16x128xf32, #tpu.memory_space<vmem>>, vector<16x128xf32>
    %c0_2 = arith.constant 0 : index
    %c0_3 = arith.constant 0 : index
    %4 = vector.load %arg4[%c0_2, %c0_3] : memref<16x128xf32, #tpu.memory_space<vmem>>, vector<16x128xf32>
    %5 = arith.mulf %3, %3 : vector<16x128xf32>
    %6 = arith.addf %4, %5 : vector<16x128xf32>
    %c0_4 = arith.constant 0 : index
    %c0_5 = arith.constant 0 : index
    %7 = vector.load %arg4[%c0_4, %c0_5] : memref<16x128xf32, #tpu.memory_space<vmem>>, vector<16x128xf32>
    tpu.vector_store %arg4[%c0_4, %c0_5], %6 {strides = array<i32>} : memref<16x128xf32, #tpu.memory_space<vmem>>, vector<16x128xf32>,
    %c0_i32_6 = arith.constant 0 : i32
    %8 = arith.cmpi eq, %arg1, %c0_i32_6 : i32
    %9 = arith.extui %8 : i1 to i32
    %c0_i32_7 = arith.constant 0 : i32
    %10 = arith.cmpi ne, %9, %c0_i32_7 : i32
    scf.if %10 {
      %c0_8 = arith.constant 0 : index
      %c0_9 = arith.constant 0 : index
      %11 = vector.load %arg4[%c0_8, %c0_9] : memref<16x128xf32, #tpu.memory_space<vmem>>, vector<16x128xf32>
      %cst = arith.constant dense<0.000000e+00> : vector<128xf32>
      %12 = vector.multi_reduction <add>, %11, %cst [0] : vector<16x128xf32> to vector<128xf32>
      %13 = vector.shape_cast %12 : vector<128xf32> to vector<1x128xf32>
      %cst_10 = arith.constant dense<0.000000e+00> : vector<1xf32>
      %14 = vector.multi_reduction <add>, %13, %cst_10 [1] : vector<1x128xf32> to vector<1xf32>
      %15 = vector.shape_cast %14 : vector<1xf32> to vector<1x1xf32>
      %c0_11 = arith.constant 0 : index
      %c0_12 = arith.constant 0 : index
      %c0_13 = arith.constant 0 : index
      %16 = vector.load %arg3[%c0_11, %c0_12, %c0_13] : memref<1x1x1xf32, #tpu.memory_space<vmem>>, vector<1x1x1xf32>
      %17 = vector.shape_cast %16 : vector<1x1x1xf32> to vector<1x1xf32>
      %18 = vector.shape_cast %15 : vector<1x1xf32> to vector<1x1x1xf32>
      tpu.vector_store %arg3[%c0_11, %c0_12, %c0_13], %18 {strides = array<i32>} : memref<1x1x1xf32, #tpu.memory_space<vmem>>, vector<1x1x1xf32>,
    } else {
    }
    return
  }
  func.func @transform_0(%arg0: i32, %arg1: i32) -> (i32, i32) {
    %c1_i32 = arith.constant 1 : i32
    %0 = arith.muli %arg0, %c1_i32 : i32
    %1 = arith.addi %0, %arg1 : i32
    %c0_i32 = arith.constant 0 : i32
    %2 = arith.minsi %1, %c0_i32 : i32
    %c0_i32_0 = arith.constant 0 : i32
    %c0_i32_1 = arith.constant 0 : i32
    return %2, %c0_i32_0 : i32, i32
  }
  func.func @transform_1(%arg0: i32, %arg1: i32) -> (i32, i32, i32) {
    %c0_i32 = arith.constant 0 : i32
    %c0_i32_0 = arith.constant 0 : i32
    %c0_i32_1 = arith.constant 0 : i32
    return %arg0, %c0_i32, %c0_i32_0 : i32, i32, i32
  }
}

</mosaic_0001>

<bundles_post_ra>
// kernel: tpu_custom_call.1
= control target key start
LH: loop header
LB: loop body
LE: loop exit
PB: predicated region body
PF: predicated region fallthrough
CT: control target
= control target key end

     0   :  { %6 = vsyncpa [#allocation4], 0  ;;  %s172_s0 = inlined_call_operand.hbm [shape: f32[16,128], index: 0, kind: input, shape index: {}]   ;;  %s173_s1 = inlined_call_operand.hbm [shape: f32[1,1,1], index: 1, kind: output, shape index: {}]  }
   0x1   :  { %7 = vsyncpa [#allocation5], 0  ;;  %s134_s6 = smov [#allocation3]   ;;  %s86_s10 = scalar_lea.hbm %s172_s0, 256 }
   0x2   :  { %s19_s7 = sshll.u32 %s134_s6, 4  ;;  %p87_p0 = scmp.ne.s32.totalorder %s172_s0, %s86_s10  ;;  %s20_s7 = int_to_ptr.vmem [resolvable:$true] %s19_s7 }
   0x3   :  { %p90_p1 = scmp.lt.u32.totalorder %s86_s10, %s172_s0 }
   0x5   :  { %p92_p2 = pnand %p90_p1, %p87_p0 }
   0x7   :  { %95 = shalt.err (!%p92_p2)
}
   0x8   :  { %s96_s15 = scalar_lea.vmem %s20_s7, 256  ;;  %p101_p4 = scmp.lt.s32.totalorder %s20_s7, %s20_s7 }
   0x9   :  { %p97_p3 = scmp.ne.s32.totalorder %s20_s7, %s96_s15  ;;  %p102_p5 = scmp.lt.s32.totalorder %s96_s15, %s96_s15 }
   0xb   :  { %p103_p6 = por %p102_p5, %p101_p4 }
   0xd   :  { %p104_p7 = pnand %p103_p6, %p97_p3 }
   0xf   :  { %107 = shalt.err (!%p104_p7)
}
  0x10   :  { %s135_s16 = smov 128   ;;  %s136_s17 = smov 8  }
  0x11   :  { %25 = dma.hbm_to_vmem [thread:$0]  %s172_s0, 256, %s20_s7, [#allocation4], %s135_s16, %s135_s16, %s136_s17  }
  0x12   :  { %130 = dma.done.wait [#allocation4], 256  }
  0x13   :  { %131 = vsyncadd [#allocation4], 4294967040  ;;  %v39_v0 = vld [vmem:[#allocation3] sm:$0xff]  ;;  %v40_v1 = vld [vmem:[#allocation3 + $0x8] sm:$0xff]  ;;  %s137_s20 = smov [#allocation6]   ;;  %vm63_vm0 = vcmask 0  }
  0x14   :  { %v43_v2 = vmul.f32 %v39_v0, %v39_v0  ;;  %v44_v3 = vmul.f32 %v40_v1, %v40_v1  ;;  %s71_s21 = sshll.u32 %s137_s20, 4  ;;  %s72_s21 = int_to_ptr.vmem [resolvable:$true] %s71_s21 }
  0x15   :  { %s108_s0 = scalar_lea.vmem %s72_s21, 16  ;;  %s112_s22 = scalar_lea.vmem %s72_s21, 32 }
  0x16   :  { %v54_v4 = vadd.f32 %v44_v3, %v43_v2  ;;  %p109_p8 = scmp.ne.s32.totalorder %s72_s21, %s108_s0  ;;  %p113_p9 = scmp.lt.s32.totalorder %s72_s21, %s72_s21 }
  0x17   :  { %p114_p10 = scmp.lt.s32.totalorder %s112_s22, %s108_s0 }
  0x18   :  { %v55_v5 = vrot.slane %v54_v4, 4 }
  0x19   :  { %p115_p11 = por %p114_p10, %p113_p9 }
  0x1a   :  { %v56_v6 = vadd.f32 %v55_v5, %v54_v4 }
  0x1b   :  { %p116_p12 = pnand %p115_p11, %p109_p8 }
  0x1c   :  { %v57_v7 = vrot.slane %v56_v6, 2 }
  0x1e   :  { %v58_v8 = vadd.f32 %v57_v7, %v56_v6 }
  0x20   :  { %v59_v9 = vrot.slane %v58_v8, 1 }
  0x22   :  { %v60_v10 = vadd.f32 %v59_v9, %v58_v8 }
  0x24   :  { %61 = vadd.xlane.f32.xlu0 %v60_v10 }
  0xb1   :  { %v62_v11 = vpop.xlane.xlu0 %61 }
  0xb2   :  { %64 = vst.msk [vmem:[#allocation6] sm:$0x1] %vm63_vm0, %v62_v11 }
  0xb3   :  { %119 = shalt.err (!%p116_p12)
}
  0xb4   :  { %s120_s25 = scalar_lea.hbm %s173_s1, 16 }
  0xb5   :  { %p121_p13 = scmp.ne.s32.totalorder %s173_s1, %s120_s25  ;;  %p124_p0 = scmp.lt.u32.totalorder %s120_s25, %s173_s1 }
  0xb7   :  { %p126_p1 = pnand %p124_p0, %p121_p13 }
  0xb9   :  { %129 = shalt.err (!%p126_p1)
}
  0xba   :  { %74 = dma.vmem_to_hbm [thread:$0]  %s72_s21, 16, %s173_s1, [#allocation5]  }
  0xbb   :  { %132 = dma.done.wait [#allocation5], 16  }
  0xbc   :  { %133 = vsyncadd [#allocation5], 4294967280 }
  0xbd   :  { %78 = vsyncpa [#allocation4], 1 }
  0xbe   :  { %79 = vsyncpa [#allocation5], 1 }

</bundles_post_ra>
